<compile_context>
chip_gen: v6e
topology: v6e:2x2x1
jax: 0.10.0
libtpu: 0.0.40
codegen_flags: <defaults>
</compile_context>

<pallas_src>
import jax
import jax.numpy as jnp
from jax.experimental import pallas as pl
from jax.experimental.pallas import tpu as pltpu

# Target elements per block: 128K elems = 512 KiB f32 (256 KiB bf16).
# x2 double-buffering x (in + out) stays far inside VMEM on every generation.
_TARGET_BLOCK_ELEMS = 128 * 1024


def _scaled_tanh_kernel(params_ref, x_ref, o_ref):
    # params_ref lives in SMEM: [alpha, gamma, beta]
    alpha = 1.0 + params_ref[0]
    gamma = 1.0 + params_ref[1]
    beta = params_ref[2]
    # Compute in f32 (works on all generations; no-op cast for f32 inputs),
    # store back in the native output dtype.
    x = x_ref[...].astype(jnp.float32)
    y = jnp.tanh(x * alpha) * gamma + beta
    o_ref[...] = y.astype(o_ref.dtype)


def scaled_tanh(x, alpha, gamma, beta):
    """Apply ScaledTanh elementwise to an arbitrary-shaped array."""
    orig_shape = x.shape
    orig_dtype = x.dtype
    total = x.size

    # Pick the widest lane-dense width (multiple of 128) dividing the size.
    width = None
    for w in (1024, 512, 256, 128):
        if total % w == 0:
            width = w
            break

    x_flat = jnp.ravel(x)
    if width is None:
        # Rare ragged case: pad only the small flat tail up to 128 lanes.
        width = 128
        padded_total = pl.cdiv(total, width) * width
        x_flat = jnp.pad(x_flat, (0, padded_total - total))

    rows = x_flat.size // width
    x2d = x_flat.reshape(rows, width)

    params = jnp.stack(
        [jnp.asarray(alpha, jnp.float32),
         jnp.asarray(gamma, jnp.float32),
         jnp.asarray(beta, jnp.float32)]
    )

    # Block sizing: big blocks to amortize per-step overhead.  For small
    # inputs the block covers the whole slab (full-dim block, bypasses the
    # (8,128) divisibility rule, single grid step = one DMA-in/compute/out).
    target_rows = max(8, ((_TARGET_BLOCK_ELEMS // width) // 8) * 8)
    if rows <= target_rows:
        block_rows = rows
    else:
        block_rows = target_rows
    grid = (pl.cdiv(rows, block_rows),)

    out2d = pl.pallas_call(
        _scaled_tanh_kernel,
        out_shape=jax.ShapeDtypeStruct((rows, width), orig_dtype),
        grid=grid,
        in_specs=[
            pl.BlockSpec(memory_space=pltpu.MemorySpace.SMEM),  # scalar params
            pl.BlockSpec((block_rows, width), lambda i: (i, 0)),
        ],
        out_specs=pl.BlockSpec((block_rows, width), lambda i: (i, 0)),
        compiler_params=pltpu.CompilerParams(
            dimension_semantics=("parallel",)
        ),
    )(params, x2d)

    out_flat = out2d.reshape(-1)
    if out_flat.size != total:
        out_flat = out_flat[:total]
    return out_flat.reshape(orig_shape)


if __name__ == "__main__":
    key = jax.random.PRNGKey(0)

    # Deterministic parameter init (module inits all three to 0.0; perturb
    # slightly so the scale/shift actually exercise the kernel math).
    alpha_param = jnp.float32(0.1)
    gamma_param = jnp.float32(-0.05)
    beta_param = jnp.float32(0.2)

    # Small NCHW input, as a conv-style activation would be.
    x = jax.random.normal(key, (2, 4, 16, 16), dtype=jnp.float32)

    y = scaled_tanh(x, alpha_param, gamma_param, beta_param)
    y = jax.block_until_ready(y)

    # Reference check in plain JAX.
    y_ref = jnp.tanh(x * (1.0 + alpha_param)) * (1.0 + gamma_param) + beta_param
    assert y.shape == x.shape
    assert y.dtype == x.dtype
    assert jnp.allclose(y, y_ref, atol=1e-5, rtol=1e-5)

    print("KERNEL_OK")
</pallas_src>

<mosaic_0001>
module attributes {stable_mosaic.version = 11 : i64} {
  func.func @_scaled_tanh_kernel(%arg0: i32, %arg1: memref<3xf32, #tpu.memory_space<smem>>, %arg2: memref<2x1024xf32, #tpu.memory_space<vmem>>, %arg3: memref<2x1024xf32, #tpu.memory_space<vmem>>) attributes {dimension_semantics = [#tpu.dimension_semantics<parallel>], iteration_bounds = array<i64: 1>, scalar_prefetch = 0 : i64, scratch_operands = 0 : i64, tpu.core_type = #tpu.core_type<tc>, window_params = [{transform_indices = @transform_0, window_bounds = array<i64: 3>}, {transform_indices = @transform_1, window_bounds = array<i64: 2, 1024>}, {transform_indices = @transform_2, window_bounds = array<i64: 2, 1024>}]} {
    %c0 = arith.constant 0 : index
    %0 = memref.load %arg1[%c0] : memref<3xf32, #tpu.memory_space<smem>>
    %cst = arith.constant 1.000000e+00 : f32
    %1 = arith.addf %cst, %0 : f32
    %c1 = arith.constant 1 : index
    %2 = memref.load %arg1[%c1] : memref<3xf32, #tpu.memory_space<smem>>
    %cst_0 = arith.constant 1.000000e+00 : f32
    %3 = arith.addf %cst_0, %2 : f32
    %c2 = arith.constant 2 : index
    %4 = memref.load %arg1[%c2] : memref<3xf32, #tpu.memory_space<smem>>
    %c0_1 = arith.constant 0 : index
    %c0_2 = arith.constant 0 : index
    %5 = vector.load %arg2[%c0_1, %c0_2] : memref<2x1024xf32, #tpu.memory_space<vmem>>, vector<2x1024xf32>
    %6 = vector.broadcast %1 : f32 to vector<2x1024xf32>
    %7 = arith.mulf %5, %6 : vector<2x1024xf32>
    %8 = math.tanh %7 : vector<2x1024xf32>
    %9 = vector.broadcast %3 : f32 to vector<2x1024xf32>
    %10 = arith.mulf %8, %9 : vector<2x1024xf32>
    %11 = vector.broadcast %4 : f32 to vector<2x1024xf32>
    %12 = arith.addf %10, %11 : vector<2x1024xf32>
    %c0_3 = arith.constant 0 : index
    %c0_4 = arith.constant 0 : index
    %13 = vector.load %arg3[%c0_3, %c0_4] : memref<2x1024xf32, #tpu.memory_space<vmem>>, vector<2x1024xf32>
    tpu.vector_store %arg3[%c0_3, %c0_4], %12 {strides = array<i32>} : memref<2x1024xf32, #tpu.memory_space<vmem>>, vector<2x1024xf32>,
    return
  }
  func.func @transform_0(%arg0: i32) -> i32 {
    %c0_i32 = arith.constant 0 : i32
    %c0_i32_0 = arith.constant 0 : i32
    return %c0_i32 : i32
  }
  func.func @transform_1(%arg0: i32) -> (i32, i32) {
    %c0_i32 = arith.constant 0 : i32
    %c0_i32_0 = arith.constant 0 : i32
    return %arg0, %c0_i32 : i32, i32
  }
  func.func @transform_2(%arg0: i32) -> (i32, i32) {
    %c0_i32 = arith.constant 0 : i32
    %c0_i32_0 = arith.constant 0 : i32
    return %arg0, %c0_i32 : i32, i32
  }
}

</mosaic_0001>

<bundles_post_ra>
// kernel: tpu_custom_call.1
= control target key start
LH: loop header
LB: loop body
LE: loop exit
PB: predicated region body
PF: predicated region fallthrough
CT: control target
= control target key end

     0   :  { %7 = vsyncpa [#allocation5], 0  ;;  %s161_s0 = inlined_call_operand.hbm [shape: f32[3], index: 0, kind: input, shape index: {}]   ;;  %s162_s1 = inlined_call_operand.hbm [shape: f32[2,1024], index: 1, kind: input, shape index: {}]   ;;  %s163_s2 = inlined_call_operand.hbm [shape: f32[2,1024], index: 2, kind: output, shape index: {}]  }
   0x1   :  { %8 = vsyncpa [#allocation3], 0 }
   0x2   :  { %9 = vsyncpa [#allocation4], 0  ;;  %s134_s9 = smov [#allocation2]   ;;  %s135_s12 = smov [#allocation6]  }
   0x3   :  { %17 = dma.hbm_to_smem %s161_s0, 16, %s134_s9, [#allocation5]  }
   0x4   :  { %s24_s13 = sshll.u32 %s135_s12, 4  ;;  %s25_s13 = int_to_ptr.vmem [resolvable:$true] %s24_s13 }
   0x5   :  { %s96_s14 = scalar_lea.vmem %s25_s13, 256  ;;  %p101_p1 = scmp.lt.s32.totalorder %s25_s13, %s25_s13 }
   0x6   :  { %p97_p0 = scmp.ne.s32.totalorder %s25_s13, %s96_s14  ;;  %p102_p2 = scmp.lt.s32.totalorder %s96_s14, %s96_s14 }
   0x8   :  { %p103_p3 = por %p102_p2, %p101_p1 }
   0xa   :  { %p104_p4 = pnand %p103_p3, %p97_p0 }
   0xc   :  { %107 = shalt.err (!%p104_p4)
}
   0xd   :  { %27 = dma.hbm_to_vmem [thread:$0]  %s162_s1, 256, %s25_s13, [#allocation3]  }
   0xe   :  { %128 = dma.done.wait [#allocation5], 16  }
   0xf   :  { %129 = vsyncadd [#allocation5], 4294967280 }
  0x10   :  { %130 = dma.done.wait [#allocation3], 256  }
  0x11   :  { %131 = vsyncadd [#allocation3], 4294967040 }
  0x12   :  { %34 = sfence }
  0x13   :  { %s35_s0 = sld [smem:[#allocation2]]  ;;  %v40_v0 = vld [vmem:[#allocation6] sm:$0xff]  ;;  %v41_v1 = vld [vmem:[#allocation6 + $0x8] sm:$0xff]  ;;  %s136_s1 = smov [#allocation7]  }
  0x14   :  { %s71_s18 = sld [smem:[#allocation2 + $0x1]]  ;;  %s61_s21 = sshll.u32 %s136_s1, 4  ;;  %s62_s21 = int_to_ptr.vmem [resolvable:$true] %s61_s21 }
  0x15   :  { %s72_s19 = sld [smem:[#allocation2 + $0x2]]  ;;  %s108_s22 = scalar_lea.vmem %s62_s21, 256 }
  0x16   :  { %p109_p5 = scmp.ne.s32.totalorder %s62_s21, %s108_s22  ;;  %p113_p6 = scmp.lt.s32.totalorder %s62_s21, %s62_s21 }
  0x17   :  { %p114_p7 = scmp.lt.s32.totalorder %s108_s22, %s108_s22 }
  0x19   :  { %s36_s17 = sadd.f32 1.0, %s35_s0  ;;  %p115_p8 = por %p114_p7, %p113_p6 }
  0x1a   :  { %s38_s20 = sadd.f32 1.0, %s71_s18 }
  0x1b   :  { %v42_v2 = vstv %s36_s17  ;;  %v50_v7 = vstv %s72_s19  ;;  %p116_p9 = pnand %p115_p8, %p109_p5 }
  0x1c   :  { %v43_v3 = vmul.f32 %v42_v2, %v40_v0  ;;  %v44_v4 = vmul.f32 %v42_v2, %v41_v1  ;;  %v47_v5 = vstv %s38_s20 }
  0x1e   :  { %76 = vtanh.f32 %v43_v3 }
  0x1f   :  { %78 = vtanh.f32 %v44_v4 }
  0x2b   :  { %v77_v6 = vpop.eup %76 }
  0x2c   :  { %v79_v8 = vpop.eup %78  ;;  %v48_v9 = vmul.f32 %v77_v6, %v47_v5 }
  0x2d   :  { %v49_v10 = vmul.f32 %v79_v8, %v47_v5 }
  0x2e   :  { %v51_v11 = vadd.f32 %v50_v7, %v48_v9 }
  0x2f   :  { %v52_v12 = vadd.f32 %v50_v7, %v49_v10 }
  0x30   :  { %53 = vst [vmem:[#allocation7] sm:$0xff] %v51_v11 }
  0x31   :  { %54 = vst [vmem:[#allocation7 + $0x8] sm:$0xff] %v52_v12 }
  0x32   :  { %119 = shalt.err (!%p116_p9)
}
  0x33   :  { %64 = dma.vmem_to_hbm [thread:$0]  %s62_s21, 256, %s163_s2, [#allocation4]  }
  0x34   :  { %132 = dma.done.wait [#allocation4], 256  }
  0x35   :  { %133 = vsyncadd [#allocation4], 4294967040 }
  0x36   :  { %68 = vsyncpa [#allocation3], 1 }
  0x37   :  { %69 = vsyncpa [#allocation4], 1 }
  0x38   :  { %70 = vsyncpa [#allocation5], 1 }

</bundles_post_ra>
